<compile_context>
chip_gen: v6e
topology: v6e:2x2x1
jax: 0.10.0
libtpu: 0.0.40
codegen_flags: <defaults>
</compile_context>

<pallas_src>
import functools

import jax
import jax.numpy as jnp
import numpy as np
from jax.experimental import pallas as pl
from jax.experimental.pallas import tpu as pltpu

# ----------------------------------------------------------------------------
# Static "scallop program": K class variables over a digit domain, P pairwise
# propositions.  Names listed in sorted order so temperature index i matches
# `enumerate(sorted(...))` exactly as in the PyTorch module.
CLASS_KEYS = ("c0", "c1", "c2")   # K = 3 class variables, sorted
DOMAIN = 10                       # each variable ranges over digits 0..9
PROPOSITIONS = ("eq_c0_c1", "eq_c1_c2", "gt_c0_c2", "lt_c0_c1")  # sorted, P = 4
PROP_SPECS = (("eq", 0, 1), ("eq", 1, 2), ("gt", 0, 2), ("lt", 0, 1))


def _round_up(x, m):
    return ((x + m - 1) // m) * m


# ----------------------------------------------------------------------------
# Kernel: one batch tile per grid step.
#   tcls_ref:  (K,) class temperature logits, SMEM
#   tprop_ref: (P,) proposition temperature logits, SMEM
#   x_ref:     (K, D, Bt) class logits, VMEM (batch on lanes)
#   out_ref:   (P, Bt) proposition probabilities, VMEM
def _constraint_kernel(tcls_ref, tprop_ref, x_ref, out_ref, *, eps, calibrate):
    K, D, _ = x_ref.shape

    # 1) (calibrated) softmax over the domain (sublane) axis, per class var.
    probs = []
    for k in range(K):
        xk = x_ref[k]                                        # (D, Bt)
        if calibrate:
            inv_t = 1.0 / (jnp.maximum(tcls_ref[k], 0.0) + eps)   # scalar
            xk = xk * inv_t                                  # reciprocal-multiply
        mx = jnp.max(xk, axis=0, keepdims=True)              # (1, Bt)
        e = jnp.exp(xk - mx)                                 # (D, Bt)
        inv_denom = 1.0 / jnp.sum(e, axis=0, keepdims=True)  # (1, Bt)
        probs.append(e * inv_denom)                          # (D, Bt)

    # Strict prefix/suffix dot on the VPU (no MXU); all ops 2-D (1, Bt):
    #   sum_u pleft[u] * sum_{v<u} pright[v]      (reverse: v>u)
    def strict_prefix_dot(pleft, pright, reverse):
        res = jnp.zeros_like(pleft[0:1])                     # (1, Bt)
        if not reverse:
            run = jnp.zeros_like(res)
            for u in range(D):                               # D=10, unrolled
                res = res + pleft[u:u + 1] * run
                run = run + pright[u:u + 1]
        else:
            run = jnp.sum(pright, axis=0, keepdims=True)     # (1, Bt)
            for u in range(D):
                run = run - pright[u:u + 1]
                res = res + pleft[u:u + 1] * run
        return res

    # 2) constraint program (product provenance) + 3) output calibration.
    rows = []
    for idx, (kind, li, ri) in enumerate(PROP_SPECS):
        if kind == "eq":
            raw = jnp.sum(probs[li] * probs[ri], axis=0, keepdims=True)  # (1, Bt)
        elif kind == "gt":
            raw = strict_prefix_dot(probs[li], probs[ri], reverse=False)
        else:  # "lt"
            raw = strict_prefix_dot(probs[li], probs[ri], reverse=True)

        if calibrate:
            inv_tp = 1.0 / (jnp.maximum(tprop_ref[idx], 0.0) + eps)
            pc = jnp.clip(raw, eps, 1.0 - eps)               # torch.logit eps-clamp
            z = jnp.log(pc) - jnp.log1p(-pc)
            raw = jax.nn.sigmoid(z * inv_tp)

        rows.append(raw)

    # Single unmasked store of the whole (P, Bt) tile.
    out_ref[...] = jnp.concatenate(rows, axis=0)


def constraint_scallop_forward(imgs, classes_temp_logits, props_temp_logits,
                               *, eps=1e-6, calibrate=True, block_b=None):
    """imgs: dict {class_key: (B, D) float32 logits}.  Returns {prop: (B,)}."""
    keys = sorted(imgs.keys())
    # Lane-dense layout: batch on the last (lane) axis -> (K, D, B).
    x = jnp.stack([imgs[k].astype(jnp.float32).T for k in keys], axis=0)
    K, D, B = x.shape
    P = len(PROPOSITIONS)

    # Batch tile: lane-aligned (multiple of 128), capped so double-buffered
    # blocks stay far inside scoped VMEM on v5e (16 MiB) and v7x (32 MiB).
    if block_b is None:
        block_b = min(4096, _round_up(B, 128))
    block_b = max(128, _round_up(block_b, 128))
    Bp = _round_up(B, block_b)
    if Bp != B:
        x = jnp.pad(x, ((0, 0), (0, 0), (0, Bp - B)))

    grid = (Bp // block_b,)
    kernel = functools.partial(_constraint_kernel, eps=eps, calibrate=calibrate)
    out = pl.pallas_call(
        kernel,
        out_shape=jax.ShapeDtypeStruct((P, Bp), jnp.float32),
        grid=grid,
        in_specs=[
            pl.BlockSpec(memory_space=pltpu.MemorySpace.SMEM),   # class temps
            pl.BlockSpec(memory_space=pltpu.MemorySpace.SMEM),   # prop temps
            pl.BlockSpec((K, D, block_b), lambda i: (0, 0, i)),  # class logits
        ],
        out_specs=pl.BlockSpec((P, block_b), lambda i: (0, i)),
        compiler_params=pltpu.CompilerParams(
            dimension_semantics=("parallel",),        # 2x on v7x megacore
        ),
    )(classes_temp_logits.astype(jnp.float32),
      props_temp_logits.astype(jnp.float32),
      x)

    out = out[:, :B]
    return {name: out[i] for i, name in enumerate(PROPOSITIONS)}


# ----------------------------------------------------------------------------
# Pure-JAX reference (independent bilinear-form formulation) for correctness.
def _relation_matrices():
    d = DOMAIN
    eye = np.eye(d, dtype=np.float32)                       # equality
    lt = np.triu(np.ones((d, d), dtype=np.float32), k=1)    # left < right
    gt = np.tril(np.ones((d, d), dtype=np.float32), k=-1)   # left > right
    return np.stack([eye, eye, gt, lt], axis=0)             # (P, D, D)


def _reference(imgs, classes_temp_logits, props_temp_logits, eps):
    keys = sorted(imgs.keys())
    t = jax.nn.relu(classes_temp_logits) + eps
    probs = {k: jax.nn.softmax(imgs[k] / t[i], axis=1)
             for i, k in enumerate(keys)}
    mats = np.asarray(_relation_matrices())
    tp = jax.nn.relu(props_temp_logits) + eps
    out = {}
    for i, name in enumerate(PROPOSITIONS):
        _, li, ri = PROP_SPECS[i]
        raw = jnp.einsum("bu,uv,bv->b", probs[keys[li]], mats[i], probs[keys[ri]])
        pc = jnp.clip(raw, eps, 1.0 - eps)
        z = jnp.log(pc) - jnp.log1p(-pc)
        out[name] = jax.nn.sigmoid(z / tp[i])
    return out


if __name__ == "__main__":
    B = 200          # non-multiple of 128 -> exercises padded final tile
    EPS = 1e-6
    key = jax.random.PRNGKey(0)

    # Deterministic example inputs: one (B, D) logit tensor per class variable.
    imgs = {}
    for k in CLASS_KEYS:
        key, sub = jax.random.split(key)
        imgs[k] = jax.random.normal(sub, (B, DOMAIN), dtype=jnp.float32)

    # Parameter init exactly as torch.nn.Parameter(torch.ones(...)).
    classes_temp_logits = jnp.ones((len(CLASS_KEYS),), dtype=jnp.float32)
    props_temp_logits = jnp.ones((len(PROPOSITIONS),), dtype=jnp.float32)

    # block_b=128 -> 2 grid steps, exercising the pipelined batch grid.
    out = constraint_scallop_forward(imgs, classes_temp_logits,
                                     props_temp_logits, eps=EPS,
                                     calibrate=True, block_b=128)
    out = {k: jax.block_until_ready(v) for k, v in out.items()}

    ref = _reference(imgs, classes_temp_logits, props_temp_logits, EPS)
    for name in PROPOSITIONS:
        np.testing.assert_allclose(np.asarray(out[name]),
                                   np.asarray(ref[name]),
                                   rtol=1e-4, atol=1e-5)

    print("KERNEL_OK")
</pallas_src>

<mosaic_0001>
module attributes {stable_mosaic.version = 11 : i64} {
  func.func @_constraint_kernel(%arg0: i32, %arg1: memref<3xf32, #tpu.memory_space<smem>>, %arg2: memref<4xf32, #tpu.memory_space<smem>>, %arg3: memref<3x10x128xf32, #tpu.memory_space<vmem>>, %arg4: memref<4x128xf32, #tpu.memory_space<vmem>>) attributes {dimension_semantics = [#tpu.dimension_semantics<parallel>], iteration_bounds = array<i64: 2>, scalar_prefetch = 0 : i64, scratch_operands = 0 : i64, tpu.core_type = #tpu.core_type<tc>, window_params = [{transform_indices = @transform_0, window_bounds = array<i64: 3>}, {transform_indices = @transform_1, window_bounds = array<i64: 4>}, {transform_indices = @transform_2, window_bounds = array<i64: 3, 10, 128>}, {transform_indices = @transform_3, window_bounds = array<i64: 4, 128>}]} {
    %c0 = arith.constant 0 : index
    %c0_0 = arith.constant 0 : index
    %c0_1 = arith.constant 0 : index
    %0 = vector.load %arg3[%c0, %c0_0, %c0_1] : memref<3x10x128xf32, #tpu.memory_space<vmem>>, vector<1x10x128xf32>
    %1 = vector.shape_cast %0 : vector<1x10x128xf32> to vector<10x128xf32>
    %c0_2 = arith.constant 0 : index
    %2 = memref.load %arg1[%c0_2] : memref<3xf32, #tpu.memory_space<smem>>
    %cst = arith.constant 0.000000e+00 : f32
    %3 = arith.maximumf %2, %cst : f32
    %cst_3 = arith.constant 9.99999997E-7 : f32
    %4 = arith.addf %3, %cst_3 : f32
    %cst_4 = arith.constant 1.000000e+00 : f32
    %5 = arith.divf %cst_4, %4 : f32
    %6 = vector.broadcast %5 : f32 to vector<10x128xf32>
    %7 = arith.mulf %1, %6 : vector<10x128xf32>
    %cst_5 = arith.constant dense<0xFF800000> : vector<128xf32>
    %8 = vector.multi_reduction <maximumf>, %7, %cst_5 [0] : vector<10x128xf32> to vector<128xf32>
    %9 = vector.shape_cast %8 : vector<128xf32> to vector<1x128xf32>
    %10 = vector.broadcast %9 : vector<1x128xf32> to vector<10x128xf32>
    %11 = arith.subf %7, %10 : vector<10x128xf32>
    %12 = math.exp %11 : vector<10x128xf32>
    %cst_6 = arith.constant dense<0.000000e+00> : vector<128xf32>
    %13 = vector.multi_reduction <add>, %12, %cst_6 [0] : vector<10x128xf32> to vector<128xf32>
    %14 = vector.shape_cast %13 : vector<128xf32> to vector<1x128xf32>
    %cst_7 = arith.constant 1.000000e+00 : f32
    %15 = vector.broadcast %cst_7 : f32 to vector<1x128xf32>
    %16 = arith.divf %15, %14 : vector<1x128xf32>
    %17 = vector.broadcast %16 : vector<1x128xf32> to vector<10x128xf32>
    %18 = arith.mulf %12, %17 : vector<10x128xf32>
    %c1 = arith.constant 1 : index
    %c0_8 = arith.constant 0 : index
    %c0_9 = arith.constant 0 : index
    %19 = vector.load %arg3[%c1, %c0_8, %c0_9] : memref<3x10x128xf32, #tpu.memory_space<vmem>>, vector<1x10x128xf32>
    %20 = vector.shape_cast %19 : vector<1x10x128xf32> to vector<10x128xf32>
    %c1_10 = arith.constant 1 : index
    %21 = memref.load %arg1[%c1_10] : memref<3xf32, #tpu.memory_space<smem>>
    %cst_11 = arith.constant 0.000000e+00 : f32
    %22 = arith.maximumf %21, %cst_11 : f32
    %cst_12 = arith.constant 9.99999997E-7 : f32
    %23 = arith.addf %22, %cst_12 : f32
    %cst_13 = arith.constant 1.000000e+00 : f32
    %24 = arith.divf %cst_13, %23 : f32
    %25 = vector.broadcast %24 : f32 to vector<10x128xf32>
    %26 = arith.mulf %20, %25 : vector<10x128xf32>
    %cst_14 = arith.constant dense<0xFF800000> : vector<128xf32>
    %27 = vector.multi_reduction <maximumf>, %26, %cst_14 [0] : vector<10x128xf32> to vector<128xf32>
    %28 = vector.shape_cast %27 : vector<128xf32> to vector<1x128xf32>
    %29 = vector.broadcast %28 : vector<1x128xf32> to vector<10x128xf32>
    %30 = arith.subf %26, %29 : vector<10x128xf32>
    %31 = math.exp %30 : vector<10x128xf32>
    %cst_15 = arith.constant dense<0.000000e+00> : vector<128xf32>
    %32 = vector.multi_reduction <add>, %31, %cst_15 [0] : vector<10x128xf32> to vector<128xf32>
    %33 = vector.shape_cast %32 : vector<128xf32> to vector<1x128xf32>
    %cst_16 = arith.constant 1.000000e+00 : f32
    %34 = vector.broadcast %cst_16 : f32 to vector<1x128xf32>
    %35 = arith.divf %34, %33 : vector<1x128xf32>
    %36 = vector.broadcast %35 : vector<1x128xf32> to vector<10x128xf32>
    %37 = arith.mulf %31, %36 : vector<10x128xf32>
    %c2 = arith.constant 2 : index
    %c0_17 = arith.constant 0 : index
    %c0_18 = arith.constant 0 : index
    %38 = vector.load %arg3[%c2, %c0_17, %c0_18] : memref<3x10x128xf32, #tpu.memory_space<vmem>>, vector<1x10x128xf32>
    %39 = vector.shape_cast %38 : vector<1x10x128xf32> to vector<10x128xf32>
    %c2_19 = arith.constant 2 : index
    %40 = memref.load %arg1[%c2_19] : memref<3xf32, #tpu.memory_space<smem>>
    %cst_20 = arith.constant 0.000000e+00 : f32
    %41 = arith.maximumf %40, %cst_20 : f32
    %cst_21 = arith.constant 9.99999997E-7 : f32
    %42 = arith.addf %41, %cst_21 : f32
    %cst_22 = arith.constant 1.000000e+00 : f32
    %43 = arith.divf %cst_22, %42 : f32
    %44 = vector.broadcast %43 : f32 to vector<10x128xf32>
    %45 = arith.mulf %39, %44 : vector<10x128xf32>
    %cst_23 = arith.constant dense<0xFF800000> : vector<128xf32>
    %46 = vector.multi_reduction <maximumf>, %45, %cst_23 [0] : vector<10x128xf32> to vector<128xf32>
    %47 = vector.shape_cast %46 : vector<128xf32> to vector<1x128xf32>
    %48 = vector.broadcast %47 : vector<1x128xf32> to vector<10x128xf32>
    %49 = arith.subf %45, %48 : vector<10x128xf32>
    %50 = math.exp %49 : vector<10x128xf32>
    %cst_24 = arith.constant dense<0.000000e+00> : vector<128xf32>
    %51 = vector.multi_reduction <add>, %50, %cst_24 [0] : vector<10x128xf32> to vector<128xf32>
    %52 = vector.shape_cast %51 : vector<128xf32> to vector<1x128xf32>
    %cst_25 = arith.constant 1.000000e+00 : f32
    %53 = vector.broadcast %cst_25 : f32 to vector<1x128xf32>
    %54 = arith.divf %53, %52 : vector<1x128xf32>
    %55 = vector.broadcast %54 : vector<1x128xf32> to vector<10x128xf32>
    %56 = arith.mulf %50, %55 : vector<10x128xf32>
    %57 = arith.mulf %18, %37 : vector<10x128xf32>
    %cst_26 = arith.constant dense<0.000000e+00> : vector<128xf32>
    %58 = vector.multi_reduction <add>, %57, %cst_26 [0] : vector<10x128xf32> to vector<128xf32>
    %59 = vector.shape_cast %58 : vector<128xf32> to vector<1x128xf32>
    %c0_27 = arith.constant 0 : index
    %60 = memref.load %arg2[%c0_27] : memref<4xf32, #tpu.memory_space<smem>>
    %cst_28 = arith.constant 0.000000e+00 : f32
    %61 = arith.maximumf %60, %cst_28 : f32
    %cst_29 = arith.constant 9.99999997E-7 : f32
    %62 = arith.addf %61, %cst_29 : f32
    %cst_30 = arith.constant 1.000000e+00 : f32
    %63 = arith.divf %cst_30, %62 : f32
    %cst_31 = arith.constant 9.99999997E-7 : f32
    %cst_32 = arith.constant 0.999998986 : f32
    %64 = vector.broadcast %cst_31 : f32 to vector<1x128xf32>
    %65 = arith.maximumf %64, %59 : vector<1x128xf32>
    %66 = vector.broadcast %cst_32 : f32 to vector<1x128xf32>
    %67 = arith.minimumf %66, %65 : vector<1x128xf32>
    %68 = math.log %67 : vector<1x128xf32>
    %cst_33 = arith.constant 0.000000e+00 : f32
    %69 = vector.broadcast %cst_33 : f32 to vector<1x128xf32>
    %70 = arith.subf %69, %67 : vector<1x128xf32>
    %71 = math.log1p %70 : vector<1x128xf32>
    %72 = arith.subf %68, %71 : vector<1x128xf32>
    %73 = vector.broadcast %63 : f32 to vector<1x128xf32>
    %74 = arith.mulf %72, %73 : vector<1x128xf32>
    %75 = arith.negf %74 : vector<1x128xf32>
    %76 = math.exp %75 : vector<1x128xf32>
    %cst_34 = arith.constant 1.000000e+00 : f32
    %77 = vector.broadcast %cst_34 : f32 to vector<1x128xf32>
    %78 = arith.addf %77, %76 : vector<1x128xf32>
    %79 = arith.divf %77, %78 : vector<1x128xf32>
    %80 = arith.mulf %37, %56 : vector<10x128xf32>
    %cst_35 = arith.constant dense<0.000000e+00> : vector<128xf32>
    %81 = vector.multi_reduction <add>, %80, %cst_35 [0] : vector<10x128xf32> to vector<128xf32>
    %82 = vector.shape_cast %81 : vector<128xf32> to vector<1x128xf32>
    %c1_36 = arith.constant 1 : index
    %83 = memref.load %arg2[%c1_36] : memref<4xf32, #tpu.memory_space<smem>>
    %cst_37 = arith.constant 0.000000e+00 : f32
    %84 = arith.maximumf %83, %cst_37 : f32
    %cst_38 = arith.constant 9.99999997E-7 : f32
    %85 = arith.addf %84, %cst_38 : f32
    %cst_39 = arith.constant 1.000000e+00 : f32
    %86 = arith.divf %cst_39, %85 : f32
    %cst_40 = arith.constant 9.99999997E-7 : f32
    %cst_41 = arith.constant 0.999998986 : f32
    %87 = vector.broadcast %cst_40 : f32 to vector<1x128xf32>
    %88 = arith.maximumf %87, %82 : vector<1x128xf32>
    %89 = vector.broadcast %cst_41 : f32 to vector<1x128xf32>
    %90 = arith.minimumf %89, %88 : vector<1x128xf32>
    %91 = math.log %90 : vector<1x128xf32>
    %cst_42 = arith.constant 0.000000e+00 : f32
    %92 = vector.broadcast %cst_42 : f32 to vector<1x128xf32>
    %93 = arith.subf %92, %90 : vector<1x128xf32>
    %94 = math.log1p %93 : vector<1x128xf32>
    %95 = arith.subf %91, %94 : vector<1x128xf32>
    %96 = vector.broadcast %86 : f32 to vector<1x128xf32>
    %97 = arith.mulf %95, %96 : vector<1x128xf32>
    %98 = arith.negf %97 : vector<1x128xf32>
    %99 = math.exp %98 : vector<1x128xf32>
    %cst_43 = arith.constant 1.000000e+00 : f32
    %100 = vector.broadcast %cst_43 : f32 to vector<1x128xf32>
    %101 = arith.addf %100, %99 : vector<1x128xf32>
    %102 = arith.divf %100, %101 : vector<1x128xf32>
    %cst_44 = arith.constant 0.000000e+00 : f32
    %103 = vector.broadcast %cst_44 : f32 to vector<1x128xf32>
    %cst_45 = arith.constant 0.000000e+00 : f32
    %104 = vector.broadcast %cst_45 : f32 to vector<1x128xf32>
    %105 = vector.extract_strided_slice %18 {offsets = [0, 0], sizes = [1, 128], strides = [1, 1]} : vector<10x128xf32> to vector<1x128xf32>
    %106 = arith.mulf %105, %104 : vector<1x128xf32>
    %107 = arith.addf %103, %106 : vector<1x128xf32>
    %108 = vector.extract_strided_slice %56 {offsets = [0, 0], sizes = [1, 128], strides = [1, 1]} : vector<10x128xf32> to vector<1x128xf32>
    %109 = arith.addf %104, %108 : vector<1x128xf32>
    %110 = vector.extract_strided_slice %18 {offsets = [1, 0], sizes = [1, 128], strides = [1, 1]} : vector<10x128xf32> to vector<1x128xf32>
    %111 = arith.mulf %110, %109 : vector<1x128xf32>
    %112 = arith.addf %107, %111 : vector<1x128xf32>
    %113 = vector.extract_strided_slice %56 {offsets = [1, 0], sizes = [1, 128], strides = [1, 1]} : vector<10x128xf32> to vector<1x128xf32>
    %114 = arith.addf %109, %113 : vector<1x128xf32>
    %115 = vector.extract_strided_slice %18 {offsets = [2, 0], sizes = [1, 128], strides = [1, 1]} : vector<10x128xf32> to vector<1x128xf32>
    %116 = arith.mulf %115, %114 : vector<1x128xf32>
    %117 = arith.addf %112, %116 : vector<1x128xf32>
    %118 = vector.extract_strided_slice %56 {offsets = [2, 0], sizes = [1, 128], strides = [1, 1]} : vector<10x128xf32> to vector<1x128xf32>
    %119 = arith.addf %114, %118 : vector<1x128xf32>
    %120 = vector.extract_strided_slice %18 {offsets = [3, 0], sizes = [1, 128], strides = [1, 1]} : vector<10x128xf32> to vector<1x128xf32>
    %121 = arith.mulf %120, %119 : vector<1x128xf32>
    %122 = arith.addf %117, %121 : vector<1x128xf32>
    %123 = vector.extract_strided_slice %56 {offsets = [3, 0], sizes = [1, 128], strides = [1, 1]} : vector<10x128xf32> to vector<1x128xf32>
    %124 = arith.addf %119, %123 : vector<1x128xf32>
    %125 = vector.extract_strided_slice %18 {offsets = [4, 0], sizes = [1, 128], strides = [1, 1]} : vector<10x128xf32> to vector<1x128xf32>
    %126 = arith.mulf %125, %124 : vector<1x128xf32>
    %127 = arith.addf %122, %126 : vector<1x128xf32>
    %128 = vector.extract_strided_slice %56 {offsets = [4, 0], sizes = [1, 128], strides = [1, 1]} : vector<10x128xf32> to vector<1x128xf32>
    %129 = arith.addf %124, %128 : vector<1x128xf32>
    %130 = vector.extract_strided_slice %18 {offsets = [5, 0], sizes = [1, 128], strides = [1, 1]} : vector<10x128xf32> to vector<1x128xf32>
    %131 = arith.mulf %130, %129 : vector<1x128xf32>
    %132 = arith.addf %127, %131 : vector<1x128xf32>
    %133 = vector.extract_strided_slice %56 {offsets = [5, 0], sizes = [1, 128], strides = [1, 1]} : vector<10x128xf32> to vector<1x128xf32>
    %134 = arith.addf %129, %133 : vector<1x128xf32>
    %135 = vector.extract_strided_slice %18 {offsets = [6, 0], sizes = [1, 128], strides = [1, 1]} : vector<10x128xf32> to vector<1x128xf32>
    %136 = arith.mulf %135, %134 : vector<1x128xf32>
    %137 = arith.addf %132, %136 : vector<1x128xf32>
    %138 = vector.extract_strided_slice %56 {offsets = [6, 0], sizes = [1, 128], strides = [1, 1]} : vector<10x128xf32> to vector<1x128xf32>
    %139 = arith.addf %134, %138 : vector<1x128xf32>
    %140 = vector.extract_strided_slice %18 {offsets = [7, 0], sizes = [1, 128], strides = [1, 1]} : vector<10x128xf32> to vector<1x128xf32>
    %141 = arith.mulf %140, %139 : vector<1x128xf32>
    %142 = arith.addf %137, %141 : vector<1x128xf32>
    %143 = vector.extract_strided_slice %56 {offsets = [7, 0], sizes = [1, 128], strides = [1, 1]} : vector<10x128xf32> to vector<1x128xf32>
    %144 = arith.addf %139, %143 : vector<1x128xf32>
    %145 = vector.extract_strided_slice %18 {offsets = [8, 0], sizes = [1, 128], strides = [1, 1]} : vector<10x128xf32> to vector<1x128xf32>
    %146 = arith.mulf %145, %144 : vector<1x128xf32>
    %147 = arith.addf %142, %146 : vector<1x128xf32>
    %148 = vector.extract_strided_slice %56 {offsets = [8, 0], sizes = [1, 128], strides = [1, 1]} : vector<10x128xf32> to vector<1x128xf32>
    %149 = arith.addf %144, %148 : vector<1x128xf32>
    %150 = vector.extract_strided_slice %18 {offsets = [9, 0], sizes = [1, 128], strides = [1, 1]} : vector<10x128xf32> to vector<1x128xf32>
    %151 = arith.mulf %150, %149 : vector<1x128xf32>
    %152 = arith.addf %147, %151 : vector<1x128xf32>
    %c2_46 = arith.constant 2 : index
    %153 = memref.load %arg2[%c2_46] : memref<4xf32, #tpu.memory_space<smem>>
    %cst_47 = arith.constant 0.000000e+00 : f32
    %154 = arith.maximumf %153, %cst_47 : f32
    %cst_48 = arith.constant 9.99999997E-7 : f32
    %155 = arith.addf %154, %cst_48 : f32
    %cst_49 = arith.constant 1.000000e+00 : f32
    %156 = arith.divf %cst_49, %155 : f32
    %cst_50 = arith.constant 9.99999997E-7 : f32
    %cst_51 = arith.constant 0.999998986 : f32
    %157 = vector.broadcast %cst_50 : f32 to vector<1x128xf32>
    %158 = arith.maximumf %157, %152 : vector<1x128xf32>
    %159 = vector.broadcast %cst_51 : f32 to vector<1x128xf32>
    %160 = arith.minimumf %159, %158 : vector<1x128xf32>
    %161 = math.log %160 : vector<1x128xf32>
    %cst_52 = arith.constant 0.000000e+00 : f32
    %162 = vector.broadcast %cst_52 : f32 to vector<1x128xf32>
    %163 = arith.subf %162, %160 : vector<1x128xf32>
    %164 = math.log1p %163 : vector<1x128xf32>
    %165 = arith.subf %161, %164 : vector<1x128xf32>
    %166 = vector.broadcast %156 : f32 to vector<1x128xf32>
    %167 = arith.mulf %165, %166 : vector<1x128xf32>
    %168 = arith.negf %167 : vector<1x128xf32>
    %169 = math.exp %168 : vector<1x128xf32>
    %cst_53 = arith.constant 1.000000e+00 : f32
    %170 = vector.broadcast %cst_53 : f32 to vector<1x128xf32>
    %171 = arith.addf %170, %169 : vector<1x128xf32>
    %172 = arith.divf %170, %171 : vector<1x128xf32>
    %cst_54 = arith.constant 0.000000e+00 : f32
    %173 = vector.broadcast %cst_54 : f32 to vector<1x128xf32>
    %cst_55 = arith.constant dense<0.000000e+00> : vector<128xf32>
    %174 = vector.multi_reduction <add>, %37, %cst_55 [0] : vector<10x128xf32> to vector<128xf32>
    %175 = vector.shape_cast %174 : vector<128xf32> to vector<1x128xf32>
    %176 = vector.extract_strided_slice %37 {offsets = [0, 0], sizes = [1, 128], strides = [1, 1]} : vector<10x128xf32> to vector<1x128xf32>
    %177 = arith.subf %175, %176 : vector<1x128xf32>
    %178 = vector.extract_strided_slice %18 {offsets = [0, 0], sizes = [1, 128], strides = [1, 1]} : vector<10x128xf32> to vector<1x128xf32>
    %179 = arith.mulf %178, %177 : vector<1x128xf32>
    %180 = arith.addf %173, %179 : vector<1x128xf32>
    %181 = vector.extract_strided_slice %37 {offsets = [1, 0], sizes = [1, 128], strides = [1, 1]} : vector<10x128xf32> to vector<1x128xf32>
    %182 = arith.subf %177, %181 : vector<1x128xf32>
    %183 = vector.extract_strided_slice %18 {offsets = [1, 0], sizes = [1, 128], strides = [1, 1]} : vector<10x128xf32> to vector<1x128xf32>
    %184 = arith.mulf %183, %182 : vector<1x128xf32>
    %185 = arith.addf %180, %184 : vector<1x128xf32>
    %186 = vector.extract_strided_slice %37 {offsets = [2, 0], sizes = [1, 128], strides = [1, 1]} : vector<10x128xf32> to vector<1x128xf32>
    %187 = arith.subf %182, %186 : vector<1x128xf32>
    %188 = vector.extract_strided_slice %18 {offsets = [2, 0], sizes = [1, 128], strides = [1, 1]} : vector<10x128xf32> to vector<1x128xf32>
    %189 = arith.mulf %188, %187 : vector<1x128xf32>
    %190 = arith.addf %185, %189 : vector<1x128xf32>
    %191 = vector.extract_strided_slice %37 {offsets = [3, 0], sizes = [1, 128], strides = [1, 1]} : vector<10x128xf32> to vector<1x128xf32>
    %192 = arith.subf %187, %191 : vector<1x128xf32>
    %193 = vector.extract_strided_slice %18 {offsets = [3, 0], sizes = [1, 128], strides = [1, 1]} : vector<10x128xf32> to vector<1x128xf32>
    %194 = arith.mulf %193, %192 : vector<1x128xf32>
    %195 = arith.addf %190, %194 : vector<1x128xf32>
    %196 = vector.extract_strided_slice %37 {offsets = [4, 0], sizes = [1, 128], strides = [1, 1]} : vector<10x128xf32> to vector<1x128xf32>
    %197 = arith.subf %192, %196 : vector<1x128xf32>
    %198 = vector.extract_strided_slice %18 {offsets = [4, 0], sizes = [1, 128], strides = [1, 1]} : vector<10x128xf32> to vector<1x128xf32>
    %199 = arith.mulf %198, %197 : vector<1x128xf32>
    %200 = arith.addf %195, %199 : vector<1x128xf32>
    %201 = vector.extract_strided_slice %37 {offsets = [5, 0], sizes = [1, 128], strides = [1, 1]} : vector<10x128xf32> to vector<1x128xf32>
    %202 = arith.subf %197, %201 : vector<1x128xf32>
    %203 = vector.extract_strided_slice %18 {offsets = [5, 0], sizes = [1, 128], strides = [1, 1]} : vector<10x128xf32> to vector<1x128xf32>
    %204 = arith.mulf %203, %202 : vector<1x128xf32>
    %205 = arith.addf %200, %204 : vector<1x128xf32>
    %206 = vector.extract_strided_slice %37 {offsets = [6, 0], sizes = [1, 128], strides = [1, 1]} : vector<10x128xf32> to vector<1x128xf32>
    %207 = arith.subf %202, %206 : vector<1x128xf32>
    %208 = vector.extract_strided_slice %18 {offsets = [6, 0], sizes = [1, 128], strides = [1, 1]} : vector<10x128xf32> to vector<1x128xf32>
    %209 = arith.mulf %208, %207 : vector<1x128xf32>
    %210 = arith.addf %205, %209 : vector<1x128xf32>
    %211 = vector.extract_strided_slice %37 {offsets = [7, 0], sizes = [1, 128], strides = [1, 1]} : vector<10x128xf32> to vector<1x128xf32>
    %212 = arith.subf %207, %211 : vector<1x128xf32>
    %213 = vector.extract_strided_slice %18 {offsets = [7, 0], sizes = [1, 128], strides = [1, 1]} : vector<10x128xf32> to vector<1x128xf32>
    %214 = arith.mulf %213, %212 : vector<1x128xf32>
    %215 = arith.addf %210, %214 : vector<1x128xf32>
    %216 = vector.extract_strided_slice %37 {offsets = [8, 0], sizes = [1, 128], strides = [1, 1]} : vector<10x128xf32> to vector<1x128xf32>
    %217 = arith.subf %212, %216 : vector<1x128xf32>
    %218 = vector.extract_strided_slice %18 {offsets = [8, 0], sizes = [1, 128], strides = [1, 1]} : vector<10x128xf32> to vector<1x128xf32>
    %219 = arith.mulf %218, %217 : vector<1x128xf32>
    %220 = arith.addf %215, %219 : vector<1x128xf32>
    %221 = vector.extract_strided_slice %37 {offsets = [9, 0], sizes = [1, 128], strides = [1, 1]} : vector<10x128xf32> to vector<1x128xf32>
    %222 = arith.subf %217, %221 : vector<1x128xf32>
    %223 = vector.extract_strided_slice %18 {offsets = [9, 0], sizes = [1, 128], strides = [1, 1]} : vector<10x128xf32> to vector<1x128xf32>
    %224 = arith.mulf %223, %222 : vector<1x128xf32>
    %225 = arith.addf %220, %224 : vector<1x128xf32>
    %c3 = arith.constant 3 : index
    %226 = memref.load %arg2[%c3] : memref<4xf32, #tpu.memory_space<smem>>
    %cst_56 = arith.constant 0.000000e+00 : f32
    %227 = arith.maximumf %226, %cst_56 : f32
    %cst_57 = arith.constant 9.99999997E-7 : f32
    %228 = arith.addf %227, %cst_57 : f32
    %cst_58 = arith.constant 1.000000e+00 : f32
    %229 = arith.divf %cst_58, %228 : f32
    %cst_59 = arith.constant 9.99999997E-7 : f32
    %cst_60 = arith.constant 0.999998986 : f32
    %230 = vector.broadcast %cst_59 : f32 to vector<1x128xf32>
    %231 = arith.maximumf %230, %225 : vector<1x128xf32>
    %232 = vector.broadcast %cst_60 : f32 to vector<1x128xf32>
    %233 = arith.minimumf %232, %231 : vector<1x128xf32>
    %234 = math.log %233 : vector<1x128xf32>
    %cst_61 = arith.constant 0.000000e+00 : f32
    %235 = vector.broadcast %cst_61 : f32 to vector<1x128xf32>
    %236 = arith.subf %235, %233 : vector<1x128xf32>
    %237 = math.log1p %236 : vector<1x128xf32>
    %238 = arith.subf %234, %237 : vector<1x128xf32>
    %239 = vector.broadcast %229 : f32 to vector<1x128xf32>
    %240 = arith.mulf %238, %239 : vector<1x128xf32>
    %241 = arith.negf %240 : vector<1x128xf32>
    %242 = math.exp %241 : vector<1x128xf32>
    %cst_62 = arith.constant 1.000000e+00 : f32
    %243 = vector.broadcast %cst_62 : f32 to vector<1x128xf32>
    %244 = arith.addf %243, %242 : vector<1x128xf32>
    %245 = arith.divf %243, %244 : vector<1x128xf32>
    %246 = tpu.concatenate %79, %102, %172, %245 in 0 : vector<1x128xf32>, vector<1x128xf32>, vector<1x128xf32>, vector<1x128xf32> -> vector<4x128xf32>
    %c0_63 = arith.constant 0 : index
    %c0_64 = arith.constant 0 : index
    %247 = vector.load %arg4[%c0_63, %c0_64] : memref<4x128xf32, #tpu.memory_space<vmem>>, vector<4x128xf32>
    tpu.vector_store %arg4[%c0_63, %c0_64], %246 {strides = array<i32>} : memref<4x128xf32, #tpu.memory_space<vmem>>, vector<4x128xf32>,
    return
  }
  func.func @transform_0(%arg0: i32) -> i32 {
    %c0_i32 = arith.constant 0 : i32
    %c0_i32_0 = arith.constant 0 : i32
    return %c0_i32 : i32
  }
  func.func @transform_1(%arg0: i32) -> i32 {
    %c0_i32 = arith.constant 0 : i32
    %c0_i32_0 = arith.constant 0 : i32
    return %c0_i32 : i32
  }
  func.func @transform_2(%arg0: i32) -> (i32, i32, i32) {
    %c0_i32 = arith.constant 0 : i32
    %c0_i32_0 = arith.constant 0 : i32
    %c0_i32_1 = arith.constant 0 : i32
    return %c0_i32, %c0_i32_0, %arg0 : i32, i32, i32
  }
  func.func @transform_3(%arg0: i32) -> (i32, i32) {
    %c0_i32 = arith.constant 0 : i32
    %c0_i32_0 = arith.constant 0 : i32
    return %c0_i32, %arg0 : i32, i32
  }
}

</mosaic_0001>

<bundles_post_ra>
// kernel: tpu_custom_call.1
= control target key start
LH: loop header
LB: loop body
LE: loop exit
PB: predicated region body
PF: predicated region fallthrough
CT: control target
= control target key end

     0   :  { %s1346_s0 = inlined_call_operand.vmem [shape: f32[3], index: 0, kind: input, shape index: {}]   ;;  %s1347_s1 = inlined_call_operand.vmem [shape: f32[4], index: 1, kind: input, shape index: {}]   ;;  %s1348_s2 = inlined_call_operand.vmem [shape: f32[3,10,256], index: 2, kind: input, shape index: {}]   ;;  %s1349_s3 = inlined_call_operand.hbm [shape: f32[4,256], index: 3, kind: output, shape index: {}]  }
   0x1   :  { %1353 = sst [smem:[#allocation12_spill]] %s1346_s0 }
   0x2   :  { %1354 = sst [smem:[#allocation13_spill]] %s1347_s1 }
   0x3   :  { %1355 = sst [smem:[#allocation14_spill]] %s1348_s2 }
   0x4   :  { %8 = vsyncpa [#allocation4], 0 }
   0x5   :  { %9 = vsyncpa [#allocation6], 0 }
   0x6   :  { %10 = vsyncpa [#allocation3], 0 }
   0x7   :  { %12 = vsyncpa [#allocation3 + $0x1], 0  ;;  %s1102_s12 = smov 0   ;;  %s1104_s13 = smov 0  }
   0x8   :  { %s1106_s14 = smov 0   ;;  %s1108_s15 = smov 0  }
   0x9 LB: > { %s1123_s16 = sadd.s32 4294967295, %s1076_s15   ;;  %s810_s17 = sadd.s32 4294967294, %s1076_s15   ;;  %s1076_s15 = sphi %s1108_s15, %s1377_s15   ;;  %s1072_s14 = sphi %s1106_s14, %s1376_s14   ;;  %s1068_s13 = sphi %s1104_s13, %s1375_s13   ;;  %s1064_s12 = sphi %s1102_s12, %s1374_s12  }
   0xa   : > { %s1127_s18 = sadd.s32 1, %s1076_s15   ;;  %s67_s19 = sadd.s32 1, %s1072_s14 }
   0xb   : > { %s64_s20 = ssub.s32 %s1076_s15, %s1127_s18  ;;  %p74_p0 = scmp.ne.s32.totalorder %s1072_s14, %s1068_s13 }
   0xc   : > { %p65_p1 = scmp.eq.s32.totalorder %s64_s20, 0  ;;  %p75_p2 = scmp.eq.s32.totalorder %s1076_s15, 0 }
   0xd   : > { %p104_p3 = scmp.eq.s32.totalorder %s1123_s16, 1  ;;  %p109_p4 = scmp.ne.s32.totalorder %s1068_s13, %s1064_s12 }
   0xe   : > { %s1139_s21 = scalar_select %p65_p1, %s1072_s14, %s67_s19  }
   0xf   : > { %p1141_p5 = por %p75_p2, %p74_p0  ;;  %p1145_p6 = por %p104_p3, %p74_p0 }
  0x10   : > { %p110_p7 = scmp.eq.s32.totalorder %s810_s17, 1  ;;  %p811_p8 = scmp.ge.s32.totalorder %s1076_s15, 1 }
  0x11   : > { %s1356_s22 = scalar_select %p1141_p5, 1, 0 }
  0x12   : > { %s1357_s23 = scalar_select %p1145_p6, 1, 0 }
  0x13   : > { %p117_p9 = scmp.lt.s32.totalorder %s1076_s15, 3  ;;  %p1151_p10 = por %p110_p7, %p109_p4 }
  0x14   : > { %p1350_p11 = scmp.eq.s32.totalorder %s1123_s16, 0  ;;  %s1360_s0 = sld [smem:[#allocation12_spill]] }
  0x15   : > { %s1358_s24 = scalar_select %p1151_p10, 1, 0 }
  0x16   : > { %p1156_p12 = pnand %p811_p8, %p117_p9  ;;  %s1361_s1 = sld [smem:[#allocation13_spill]] }
  0x18   : > { %s1359_s25 = scalar_select %p1156_p12, 1, 0 }
  0x19   : > { %p863_p13 = pneg %p1156_p12 }
  0x1a   : > { %s130_s28 = sshll.u32 %s1360_s0, 4  ;;  %s131_s28 = int_to_ptr.vmem [resolvable:$true] %s130_s28 }
  0x1b   : > { %p1170_p0 = pnand %p1350_p11, %p863_p13  ;;  %s978_s6 = scalar_lea.vmem %s131_s28, 16 }
  0x1c   : > { %s141_s4 = sshll.u32 %s1361_s1, 4  ;;  %p979_p1 = scmp.ne.s32.totalorder %s131_s28, %s978_s6  ;;  %s142_s4 = int_to_ptr.vmem [resolvable:$true] %s141_s4 }
  0x1d   : > { %p980_p2 = pneg %p1170_p0  ;;  %p986_p7 = scmp.lt.s32.totalorder %s131_s28, %s131_s28 }
  0x1e   : > { %p987_p8 = scmp.lt.s32.totalorder %s978_s6, %s978_s6 }
  0x1f   : > { %p981_p3 = pnand %p980_p2, %p979_p1 }
  0x20   : > { %p988_p9 = por %p987_p8, %p986_p7 }
  0x21   : > { %p982_p4 = pneg %p981_p3 }
  0x23   : > { %p989_p10 = pnand %p988_p9, %p982_p4 }
  0x25   : > { %992 = shalt.err (!%p989_p10)
}
  0x26   : > { %s1078_s7 = smov [#allocation2]   ;;  %s993_s8 = scalar_lea.vmem %s142_s4, 16 }
  0x27   : > { %866 = dma.vmem_to_smem (!%p1170_p0), %s131_s28, 16, %s1078_s7, [#allocation4]  }
  0x28   : > { %p994_p13 = scmp.ne.s32.totalorder %s142_s4, %s993_s8  ;;  %p1001_p12 = scmp.lt.s32.totalorder %s142_s4, %s142_s4 }
  0x29   : > { %p1002_p5 = scmp.lt.s32.totalorder %s993_s8, %s993_s8 }
  0x2a   : > { %p996_p11 = pnand %p994_p13, %p980_p2 }
  0x2b   : > { %p1003_p1 = por %p1002_p5, %p1001_p12 }
  0x2c   : > { %p997_p6 = pneg %p996_p11 }
  0x2e   : > { %p1004_p3 = pnand %p1003_p1, %p997_p6 }
  0x30   : > { %1007 = shalt.err (!%p1004_p3)
}
  0x31   : > { %s1079_s9 = smov [#allocation5]   ;;  %p814_p10 = scmp.ge.s32.totalorder %s1076_s15, 2 }
  0x32   : > { %869 = dma.vmem_to_smem (!%p1170_p0), %s142_s4, 16, %s1079_s9, [#allocation6]  }
  0x33   : > { %148 = sbr.rel (%p814_p10) target bundleno = 69 (0x45), region = 24  ;;  %p1363_p4 = scmp.ne.s32.totalorder (!%p814_p10), %s1356_s22, 0 }
  0x38   : > { %151 = sbr.rel (!%p1363_p4) target bundleno = 69 (0x45), region = 28  ;;  %s153_s10 = sand.u32 (%p1363_p4), 1, %s1072_s14  }
  0x39   : > { %s815_s11 = sshll.u32 (%p1363_p4), %s1076_s15, 3  ;;  %s837_s17 = smul.u32 (%p1363_p4), 48, %s153_s10 }
  0x3a   : > { %s1364_s2 = sld [smem:[#allocation14_spill]] (%p1363_p4) }
  0x3b   : > { %s155_s27 = scalar_lea.vmem (%p1363_p4), [#allocation7], %s837_s17 }
  0x40   : > { %s157_s26 = scalar_lea.vmem %s1364_s2, %s815_s11 }
  0x41   : > { %v196_v0 = vld [vmem:[%s157_s26] sm:$0xff]  ;;  %v198_v1 = vld [vmem:[%s157_s26 + $0x10] sm:$0xff] }
  0x42   : > { %v200_v2 = vld [vmem:[%s157_s26 + $0x20] sm:$0xff]  ;;  %v202_v3 = vld [vmem:[%s157_s26 + $0x30] sm:$0xff]  ;;  %197 = vst [vmem:[%s155_s27] sm:$0xff] %v196_v0  ;;  %199 = vst [vmem:[%s155_s27 + $0x8] sm:$0xff] %v198_v1 }
  0x43   : > { %v204_v4 = vld [vmem:[%s157_s26 + $0x40] sm:$0xff]  ;;  %v206_v5 = vld [vmem:[%s157_s26 + $0x50] sm:$0xff]  ;;  %201 = vst [vmem:[%s155_s27 + $0x10] sm:$0xff] %v200_v2  ;;  %203 = vst [vmem:[%s155_s27 + $0x18] sm:$0xff] %v202_v3 }
  0x44   : > { %205 = vst [vmem:[%s155_s27 + $0x20] sm:$0xff] %v204_v4  ;;  %207 = vst [vmem:[%s155_s27 + $0x28] sm:$0xff] %v206_v5 }
  0x45 PF: > { %p1365_p5 = scmp.ne.s32.totalorder %s1359_s25, 0 }
  0x46   : > { %p1366_p6 = scmp.eq.s32.totalorder (!%p1365_p5), %s1123_s16, 0 }
  0x47   : > { %216 = sbr.rel (%p1365_p5) target bundleno = 352 (0x160), region = 66 }
  0x4c   : > { %1051 = dma.done.wait (%p1366_p6), [#allocation4], 16   ;;  %p1367_p11 = pmov %p1366_p6 }
  0x4d   : > { %p1368_p12 = pmov %p1366_p6 }
  0x4e   : > { %1053 = vsyncadd (%p1367_p11), [#allocation4], 4294967280 }
  0x4f   : > { %1055 = dma.done.wait (%p1368_p12), [#allocation6], 16   ;;  %p1369_p0 = pmov %p1366_p6 }
  0x50   : > { %s1201_s22 = sand.u32 1, %s1068_s13  }
  0x51   : > { %1057 = vsyncadd (%p1369_p0), [#allocation6], 4294967280  ;;  %s838_s28 = smul.u32 48, %s1201_s22 }
  0x53   : > { %s1204_s29 = scalar_lea.vmem [#allocation7], %s838_s28 }
  0x54   : > { %233 = sfence }
  0x55   : > { %s253_s25 = sld [smem:[#allocation2]]  ;;  %s1080_s8 = smov 0.0   ;;  %v251_v20 = vld [vmem:[%s1204_s29] sm:$0xff]  ;;  %v252_v21 = vld [vmem:[%s1204_s29 + $0x8] sm:$0x3]  ;;  %v820_v22 = vld [vmem:[%s1204_s29 + $0x10] sm:$0xff] }
  0x56   : > { %s822_s30 = sld [smem:[#allocation2 + $0x1]]  ;;  %v821_v23 = vld [vmem:[%s1204_s29 + $0x18] sm:$0x3]  ;;  %vm262_vm0 = vcmask 1041408   ;;  %v823_v25 = vld [vmem:[%s1204_s29 + $0x20] sm:$0xff]  ;;  %vm703_vm5 = vcmask 1040384  }
  0x57   : > { %s825_s4 = sld [smem:[#allocation2 + $0x2]]  ;;  %v824_v26 = vld [vmem:[%s1204_s29 + $0x28] sm:$0x3]  ;;  %vm706_vm6 = vcmask 1042432   ;;  %p1372_p7 = scmp.ne.s32.totalorder %s1357_s23, 0 }
  0x58   : > { %s375_s5 = sld [smem:[#allocation5]] }
  0x59   : > { %s827_s6 = sld [smem:[#allocation5 + $0x1]] }
  0x5a   : > { %s829_s7 = sld [smem:[#allocation5 + $0x2]] }
  0x5b   : > { %s254_s9 = smax.f32 %s1080_s8, %s253_s25  ;;  %s831_s25 = sld [smem:[#allocation5 + $0x3]] }
  0x5c   : > { %s255_s10 = sadd.f32 1e-06, %s254_s9  ;;  %s293_s11 = smax.f32 %s1080_s8, %s822_s30 }
  0x5d   : > { %s294_s17 = sadd.f32 1e-06, %s293_s11  ;;  %s331_s19 = smax.f32 %s1080_s8, %s825_s4 }
  0x5e   : > { %v256_v6 = vstv %s255_s10  ;;  %s332_s20 = sadd.f32 1e-06, %s331_s19  ;;  %s376_s26 = smax.f32 %s1080_s8, %s375_s5 }
  0x5f   : > { %914 = vrcp.f32 %v256_v6  ;;  %v295_v7 = vstv %s294_s17  ;;  %s377_s27 = sadd.f32 1e-06, %s376_s26  ;;  %s415_s28 = smax.f32 %s1080_s8, %s827_s6 }
  0x60   : > { %916 = vrcp.f32 %v295_v7  ;;  %v333_v8 = vstv %s332_s20  ;;  %s416_s0 = sadd.f32 1e-06, %s415_s28  ;;  %s536_s1 = smax.f32 %s1080_s8, %s829_s7 }
  0x61   : > { %918 = vrcp.f32 %v333_v8  ;;  %v378_v9 = vstv %s377_s27  ;;  %s537_s2 = sadd.f32 1e-06, %s536_s1  ;;  %s669_s30 = smax.f32 %s1080_s8, %s831_s25 }
  0x62   : > { %920 = vrcp.f32 %v378_v9  ;;  %v417_v10 = vstv %s416_s0  ;;  %s670_s4 = sadd.f32 1e-06, %s669_s30  ;;  %s819_s8 = sshll.u32 %s1201_s22, 2 }
  0x63   : > { %922 = vrcp.f32 %v417_v10  ;;  %v538_v11 = vstv %s537_s2  ;;  %s834_s9 = sshll.u32 %s1123_s16, 6  ;;  %s250_s10 = scalar_lea.vmem [#allocation8], %s819_s8 }
  0x64   : > { %924 = vrcp.f32 %v538_v11  ;;  %v671_v12 = vstv %s670_s4  ;;  %s723_s11 = sshll.u32 %s250_s10, 4  ;;  %s1309_s20 = scalar_lea.hbm %s1349_s3, %s834_s9  ;;  %s724_s11 = int_to_ptr.vmem [resolvable:$true] %s723_s11 }
  0x65   : > { %926 = vrcp.f32 %v671_v12  ;;  %s710_s26 = scalar_lea.sflag [#allocation3], %s1201_s22  ;;  %s1008_s27 = scalar_lea.vmem %s724_s11, 64 }
  0x66   : > { %p1009_p2 = scmp.ne.s32.totalorder %s724_s11, %s1008_s27  ;;  %s1081_s16 = smov [#allocation8]  }
  0x67   : > { %s1012_s28 = sshll.u32 %s1081_s16, 4  ;;  %s1013_s28 = int_to_ptr.vmem [resolvable:$false] %s1012_s28 }
  0x68   : > { %p1010_p8 = pnand %p1009_p2, %p1372_p7  ;;  %s1014_s25 = scalar_lea.vmem %s1013_s28, 128 }
  0x69   : > { %p1015_p13 = scmp.lt.s32.totalorder %s724_s11, %s1013_s28  ;;  %p1016_p1 = scmp.lt.s32.totalorder %s1014_s25, %s1008_s27 }
  0x6a   : > { %p1011_p9 = pneg %p1010_p8 }
  0x6b   : > { %p1017_p3 = por %p1016_p1, %p1015_p13 }
  0x6c   : > { %v915_v13 = vpop.eup %914 }
  0x6d   : > { %v917_v14 = vpop.eup %916  ;;  %839 = vpush %v915_v13  ;;  %p1018_p4 = pnand %p1017_p3, %p1011_p9 }
  0x6e   : > { %v919_v15 = vpop.eup %918  ;;  %841 = vpush %v917_v14 }
  0x6f   : > { %v921_v16 = vpop.eup %920  ;;  %843 = vpush %v919_v15 }
  0x70   : > { %v923_v17 = vpop.eup %922  ;;  %845 = vpush %v921_v16 }
  0x71   : > { %v925_v18 = vpop.eup %924  ;;  %847 = vpush %v923_v17 }
  0x72   : > { %849 = vpush %v925_v18  ;;  %v927_v19 = vpop.eup %926 }
  0x73   : > { %851 = vpush %v927_v19 }
  0x9e   : > { %s840_s0 = spop %839 }
  0x9f   : > { %v259_v24 = vstv %s840_s0  ;;  %s842_s1 = spop %841 }
  0xa0   : > { %v260_v27 = vmul.f32 %v259_v24, %v251_v20  ;;  %v261_v28 = vmul.f32 %v259_v24, %v252_v21  ;;  %v298_v29 = vstv %s842_s1  ;;  %s844_s2 = spop %843 }
  0xa1   : > { %v299_v30 = vmul.f32 %v820_v22, %v298_v29  ;;  %v300_v31 = vmul.f32 %v821_v23, %v298_v29  ;;  %v336_v32 = vstv %s844_s2  ;;  %s1291_s29 = spop %845 }
  0xa2   : > { %v263_v33 = vsel %vm262_vm0, %v261_v28, -inf  ;;  %v337_v34 = vmul.f32 %v823_v25, %v336_v32  ;;  %v338_v35 = vmul.f32 %v824_v26, %v336_v32  ;;  %s848_s5 = spop %847 }
  0xa3   : > { %v264_v36 = vmax.f32 %v260_v27, %v263_v33  ;;  %v301_v37 = vsel %vm262_vm0, %v300_v31, -inf  ;;  %s850_s6 = spop %849 }
  0xa4   : > { %v302_v38 = vmax.f32 %v299_v30, %v301_v37  ;;  %v339_v39 = vsel %vm262_vm0, %v338_v35, -inf  ;;  %s852_s7 = spop %851 }
  0xa5   : > { %v265_v40 = vrot.slane %v264_v36, 4  ;;  %v340_v41 = vmax.f32 %v337_v34, %v339_v39 }
  0xa6   : > { %v303_v42 = vrot.slane %v302_v38, 4 }
  0xa7   : > { %v266_v43 = vmax.f32 %v264_v36, %v265_v40  ;;  %v341_v44 = vrot.slane %v340_v41, 4 }
  0xa8   : > { %v304_v45 = vmax.f32 %v302_v38, %v303_v42 }
  0xa9   : > { %v267_v46 = vrot.slane %v266_v43, 2  ;;  %v342_v47 = vmax.f32 %v340_v41, %v341_v44 }
  0xaa   : > { %v305_v48 = vrot.slane %v304_v45, 2 }
  0xab   : > { %v268_v49 = vmax.f32 %v266_v43, %v267_v46  ;;  %v343_v50 = vrot.slane %v342_v47, 2 }
  0xac   : > { %v306_v51 = vmax.f32 %v304_v45, %v305_v48 }
  0xad   : > { %v269_v52 = vrot.slane %v268_v49, 1  ;;  %v344_v53 = vmax.f32 %v342_v47, %v343_v50 }
  0xae   : > { %v307_v54 = vrot.slane %v306_v51, 1 }
  0xaf   : > { %v270_v55 = vmax.f32 %v268_v49, %v269_v52  ;;  %v345_v56 = vrot.slane %v344_v53, 1 }
  0xb0   : > { %v308_v57 = vmax.f32 %v306_v51, %v307_v54 }
  0xb1   : > { %v271_v58 = vsub.f32 %v260_v27, %v270_v55  ;;  %v272_v59 = vsub.f32 %v261_v28, %v270_v55  ;;  %v346_v60 = vmax.f32 %v344_v53, %v345_v56 }
  0xb2   : > { %v309_v61 = vsub.f32 %v299_v30, %v308_v57  ;;  %v310_v62 = vsub.f32 %v300_v31, %v308_v57 }
  0xb3   : > { %v273_v63 = vmul.f32 1.442695, %v271_v58  ;;  %v275_v0 = vmul.f32 1.442695, %v272_v59  ;;  %v347_v1 = vsub.f32 %v337_v34, %v346_v60  ;;  %v348_v2 = vsub.f32 %v338_v35, %v346_v60 }
  0xb4   : > { %v311_v3 = vmul.f32 1.442695, %v309_v61  ;;  %v313_v4 = vmul.f32 1.442695, %v310_v62 }
  0xb5   : > { %928 = vpow2.f32 %v273_v63  ;;  %v349_v5 = vmul.f32 1.442695, %v347_v1  ;;  %v351_v6 = vmul.f32 1.442695, %v348_v2 }
  0xb6   : > { %930 = vpow2.f32 %v275_v0 }
  0xb7   : > { %932 = vpow2.f32 %v311_v3 }
  0xb8   : > { %934 = vpow2.f32 %v313_v4 }
  0xb9   : > { %936 = vpow2.f32 %v349_v5 }
  0xba   : > { %938 = vpow2.f32 %v351_v6 }
  0xc2   : > { %v929_v7 = vpop.eup %928 }
  0xc3   : > { %v931_v8 = vpop.eup %930 }
  0xc4   : > { %v933_v9 = vpop.eup %932  ;;  %v277_v10 = vsel %vm262_vm0, %v931_v8, 0.0 }
  0xc5   : > { %v935_v11 = vpop.eup %934  ;;  %v278_v12 = vadd.f32 %v929_v7, %v277_v10 }
  0xc6   : > { %v937_v13 = vpop.eup %936  ;;  %v315_v14 = vsel %vm262_vm0, %v935_v11, 0.0 }
  0xc7   : > { %v939_v15 = vpop.eup %938  ;;  %v279_v16 = vrot.slane %v278_v12, 4  ;;  %v316_v17 = vadd.f32 %v933_v9, %v315_v14 }
  0xc8   : > { %v353_v18 = vsel %vm262_vm0, %v939_v15, 0.0 }
  0xc9   : > { %v280_v19 = vadd.f32 %v279_v16, %v278_v12  ;;  %v317_v20 = vrot.slane %v316_v17, 4  ;;  %v354_v21 = vadd.f32 %v937_v13, %v353_v18 }
  0xcb   : > { %v281_v22 = vrot.slane %v280_v19, 2  ;;  %v318_v23 = vadd.f32 %v317_v20, %v316_v17  ;;  %v355_v24 = vrot.slane %v354_v21, 4 }
  0xcd   : > { %v282_v25 = vadd.f32 %v281_v22, %v280_v19  ;;  %v319_v26 = vrot.slane %v318_v23, 2  ;;  %v356_v27 = vadd.f32 %v355_v24, %v354_v21 }
  0xcf   : > { %v283_v28 = vrot.slane %v282_v25, 1  ;;  %v320_v29 = vadd.f32 %v319_v26, %v318_v23  ;;  %v357_v30 = vrot.slane %v356_v27, 2 }
  0xd1   : > { %v284_v31 = vadd.f32 %v283_v28, %v282_v25  ;;  %v321_v32 = vrot.slane %v320_v29, 1  ;;  %v358_v33 = vadd.f32 %v357_v30, %v356_v27 }
  0xd3   : > { %940 = vrcp.f32 %v284_v31  ;;  %v322_v34 = vadd.f32 %v321_v32, %v320_v29  ;;  %v359_v35 = vrot.slane %v358_v33, 1 }
  0xd5   : > { %942 = vrcp.f32 %v322_v34  ;;  %v360_v36 = vadd.f32 %v359_v35, %v358_v33 }
  0xd7   : > { %944 = vrcp.f32 %v360_v36 }
  0xe0   : > { %v941_v37 = vpop.eup %940 }
  0xe1   : > { %v1218_v38 = vmul.f32 %v941_v37, %v929_v7  ;;  %v1220_v40 = vmul.f32 %v941_v37, %v931_v8 }
  0xe2   : > { %v943_v39 = vpop.eup %942 }
  0xe3   : > { %v1222_v41 = vmul.f32 %v943_v39, %v933_v9  ;;  %v1224_v42 = vmul.f32 %v943_v39, %v935_v11  ;;  %v443_v5 = vmul.f32 0.0, %v1218_v38 }
  0xe4   : > { %v945_v43 = vpop.eup %944 }
  0xe5   : > { %v564_v44 = vsel %vm262_vm0, %v1224_v42, 0.0  ;;  %v1228_v45 = vmul.f32 %v945_v43, %v937_v13  ;;  %v1230_v46 = vmul.f32 %v945_v43, %v939_v15  ;;  %v365_v47 = vmul.f32 %v1222_v41, %v1218_v38 }
  0xe6   : > { %v565_v48 = vadd.f32 %v564_v44, %v1222_v41  ;;  %v366_v49 = vmul.f32 %v1224_v42, %v1220_v40  ;;  %v576_v39 = vrot.slane %v1222_v41, 1 }
  0xe7   : > { %v405_v50 = vmul.f32 %v1230_v46, %v1224_v42  ;;  %v404_v51 = vmul.f32 %v1228_v45, %v1222_v41  ;;  %v447_v52 = vrot.slane %v1228_v45, 7  ;;  %v455_v53 = vrot.slane %v1228_v45, 1 }
  0xe8   : > { %v566_v54 = vrot.slane %v565_v48, 4  ;;  %v367_v55 = vsel %vm262_vm0, %v366_v49, 0.0  ;;  %v466_v56 = vrot.slane %v1228_v45, 2  ;;  %v477_v6 = vrot.slane %v1228_v45, 3 }
  0xe9   : > { %v368_v57 = vadd.f32 %v367_v55, %v365_v47  ;;  %v406_v58 = vsel %vm262_vm0, %v405_v50, 0.0  ;;  %v449_v59 = vmul.f32 %v447_v52, %v1218_v38  ;;  %v457_v60 = vadd.f32 %v455_v53, %v1228_v45 }
  0xea   : > { %v567_v61 = vadd.f32 %v566_v54, %v565_v48  ;;  %v407_v62 = vadd.f32 %v406_v58, %v404_v51  ;;  %v488_v10 = vrot.slane %v1228_v45, 4  ;;  %v499_v13 = vrot.slane %v1228_v45, 5 }
  0xeb   : > { %v369_v63 = vrot.slane %v368_v57, 4  ;;  %v451_v0 = vrot.slane %v449_v59, 1  ;;  %v459_v1 = vrot.slane %v457_v60, 6  ;;  %v468_v2 = vadd.f32 %v466_v56, %v457_v60 }
  0xec   : > { %v568_v3 = vrot.slane %v567_v61, 2  ;;  %v408_v4 = vrot.slane %v407_v62, 4  ;;  %v510_v30 = vrot.slane %v1228_v45, 6  ;;  %v587_v45 = vrot.slane %v1222_v41, 2 }
  0xed   : > { %v370_v7 = vadd.f32 %v369_v63, %v368_v57  ;;  %v461_v8 = vmul.f32 %v459_v1, %v1218_v38  ;;  %v470_v9 = vrot.slane %v468_v2, 5  ;;  %v479_v12 = vadd.f32 %v477_v6, %v468_v2 }
  0xee   : > { %v409_v11 = vadd.f32 %v408_v4, %v407_v62  ;;  %v569_v14 = vadd.f32 %v568_v3, %v567_v61  ;;  %v453_v16 = vadd.f32 %v451_v0, %v443_v5 }
  0xef   : > { %v371_v15 = vrot.slane %v370_v7, 2  ;;  %v463_v17 = vrot.slane %v461_v8, 2  ;;  %v472_v18 = vmul.f32 %v470_v9, %v1218_v38  ;;  %v481_v20 = vrot.slane %v479_v12, 4 }
  0xf0   : > { %v410_v19 = vrot.slane %v409_v11, 2  ;;  %v490_v21 = vadd.f32 %v488_v10, %v479_v12  ;;  %v570_v22 = vrot.slane %v569_v14, 1  ;;  %v609_v9 = vrot.slane %v1222_v41, 4 }
  0xf1   : > { %v465_v23 = vadd.f32 %v463_v17, %v453_v16  ;;  %v474_v24 = vrot.slane %v472_v18, 3  ;;  %v372_v25 = vadd.f32 %v371_v15, %v370_v7  ;;  %v483_v26 = vmul.f32 %v481_v20, %v1218_v38 }
  0xf2   : > { %v492_v27 = vrot.slane %v490_v21, 3  ;;  %v501_v28 = vadd.f32 %v499_v13, %v490_v21  ;;  %v571_v31 = vadd.f32 %v570_v22, %v569_v14  ;;  %v411_v32 = vadd.f32 %v410_v19, %v409_v11 }
  0xf3   : > { %v476_v29 = vadd.f32 %v474_v24, %v465_v23  ;;  %v485_v33 = vrot.slane %v483_v26, 4  ;;  %v373_v43 = vrot.slane %v372_v25, 1  ;;  %v598_v7 = vrot.slane %v1222_v41, 3 }
  0xf4   : > { %v494_v34 = vmul.f32 %v492_v27, %v1218_v38  ;;  %v503_v35 = vrot.slane %v501_v28, 2  ;;  %v512_v36 = vadd.f32 %v510_v30, %v501_v28  ;;  %v572_v37 = vsub.f32 %v571_v31, %v1222_v41 }
  0xf5   : > { %v487_v44 = vadd.f32 %v485_v33, %v476_v29  ;;  %v412_v51 = vrot.slane %v411_v32, 1  ;;  %v374_v58 = vadd.f32 %v373_v43, %v372_v25  ;;  %v620_v16 = vrot.slane %v1222_v41, 5 }
  0xf6   : > { %v496_v47 = vrot.slane %v494_v34, 5  ;;  %v505_v48 = vmul.f32 %v503_v35, %v1218_v38  ;;  %v514_v49 = vrot.slane %v512_v36, 1  ;;  %v523_v50 = vadd.f32 %v512_v36, %v447_v52 }
  0xf7   : > { %v578_v55 = vsub.f32 %v572_v37, %v576_v39  ;;  %v413_v0 = vadd.f32 %v412_v51, %v411_v32  ;;  %v381_v4 = vmax.f32 %v374_v58, 1e-06  ;;  %v573_v10 = vmul.f32 %v572_v37, %v1218_v38 }
  0xf8   : > { %v498_v53 = vadd.f32 %v496_v47, %v487_v44  ;;  %v507_v54 = vrot.slane %v505_v48, 6  ;;  %v516_v56 = vmul.f32 %v514_v49, %v1218_v38  ;;  %v526_v57 = vadd.f32 %v523_v50, %v1230_v46 }
  0xf9   : > { %v580_v60 = vrot.slane %v578_v55, 7  ;;  %v589_v61 = vsub.f32 %v578_v55, %v587_v45  ;;  %v524_v52 = vmul.f32 %v523_v50, %v1220_v40  ;;  %v420_v46 = vmax.f32 %v413_v0, 1e-06 }
  0xfa   : > { %v509_v59 = vadd.f32 %v507_v54, %v498_v53  ;;  %v518_v62 = vrot.slane %v516_v56, 7  ;;  %v528_v63 = vrot.slane %v526_v57, 7  ;;  %v382_v14 = vmin.f32 %v381_v4, 0.999999 }
  0xfb   : > { %v582_v2 = vmul.f32 %v580_v60, %v1218_v38  ;;  %v591_v3 = vrot.slane %v589_v61, 6  ;;  %v600_v13 = vsub.f32 %v589_v61, %v598_v7  ;;  %v421_v21 = vmin.f32 %v420_v46, 0.999999 }
  0xfc   : > { %v520_v1 = vadd.f32 %v518_v62, %v509_v59  ;;  %v530_v5 = vmul.f32 %v528_v63, %v1220_v40  ;;  %v631_v23 = vrot.slane %v1222_v41, 6  ;;  %v1273_v28 = vsub.f32 0.0, %v382_v14 }
  0xfd   : > { %v584_v11 = vrot.slane %v582_v2, 1  ;;  %v593_v12 = vmul.f32 %v591_v3, %v1218_v38  ;;  %v602_v19 = vrot.slane %v600_v13, 5  ;;  %v611_v20 = vsub.f32 %v600_v13, %v609_v9 }
  0xfe   : > { %v525_v6 = vadd.f32 %v524_v52, %v520_v1  ;;  %v532_v8 = vrot.slane %v530_v5, 1  ;;  %v1276_v34 = vsub.f32 0.0, %v421_v21  ;;  %v642_v43 = vrot.slane %v1222_v41, 7 }
  0xff   : > { %v586_v17 = vadd.f32 %v584_v11, %v573_v10  ;;  %v595_v18 = vrot.slane %v593_v12, 2  ;;  %v604_v25 = vmul.f32 %v602_v19, %v1218_v38  ;;  %v613_v26 = vrot.slane %v611_v20, 4 }
 0x100   : > { %v534_v15 = vadd.f32 %v532_v8, %v525_v6  ;;  %v622_v27 = vsub.f32 %v611_v20, %v620_v16  ;;  %v386_v44 = vadd.f32 1.0, %v1273_v28  ;;  %v425_v51 = vadd.f32 1.0, %v1276_v34 }
 0x101   : > { %v597_v24 = vadd.f32 %v595_v18, %v586_v17  ;;  %v606_v30 = vrot.slane %v604_v25, 3  ;;  %v615_v31 = vmul.f32 %v613_v26, %v1218_v38  ;;  %v657_v57 = vrot.slane %v1224_v42, 1 }
 0x102   : > { %v541_v22 = vmax.f32 %v534_v15, 1e-06  ;;  %v624_v32 = vrot.slane %v622_v27, 3  ;;  %v633_v33 = vsub.f32 %v622_v27, %v631_v23  ;;  %v389_v4 = vmul.f32 -0.5, %v1273_v28 }
 0x103   : > { %v608_v36 = vadd.f32 %v606_v30, %v597_v24  ;;  %v617_v37 = vrot.slane %v615_v31, 4  ;;  %v428_v5 = vmul.f32 -0.5, %v1276_v34  ;;  %v431_v17 = vand.u32 2147483647, %v1276_v34 }
 0x104   : > { %v542_v29 = vmin.f32 %v541_v22, 0.999999  ;;  %v626_v39 = vmul.f32 %v624_v32, %v1218_v38  ;;  %v635_v50 = vrot.slane %v633_v33, 2  ;;  %v644_v45 = vsub.f32 %v633_v33, %v642_v43 }
 0x105   : > { %v619_v48 = vadd.f32 %v617_v37, %v608_v36  ;;  %v390_v11 = vadd.f32 1.0, %v389_v4  ;;  %v429_v13 = vadd.f32 1.0, %v428_v5  ;;  %vm432_vm3 = vcmp.lt.f32.partialorder %v431_v17, 0.0004427343 }
 0x106   : > { %v545_v35 = vsub.f32 0.0, %v542_v29  ;;  %v628_v49 = vrot.slane %v626_v39, 5  ;;  %v637_v54 = vmul.f32 %v635_v50, %v1218_v38  ;;  %v646_v55 = vrot.slane %v644_v45, 1 }
 0x107   : > { %v653_v56 = vsub.f32 %v644_v45, %v1224_v42  ;;  %v391_v23 = vmul.f32 %v390_v11, %v1273_v28  ;;  %v430_v26 = vmul.f32 %v429_v13, %v1276_v34  ;;  %v396_v36 = vstv %s1291_s29 }
 0x108   : > { %v546_v47 = vadd.f32 1.0, %v545_v35  ;;  %v630_v53 = vadd.f32 %v628_v49, %v619_v48  ;;  %v639_v41 = vrot.slane %v637_v54, 6  ;;  %v648_v58 = vmul.f32 %v646_v55, %v1218_v38 }
 0x109   : > { %v659_v59 = vsub.f32 %v653_v56, %v657_v57  ;;  %v654_v0 = vmul.f32 %v653_v56, %v1220_v40  ;;  %v549_v42 = vmul.f32 -0.5, %v545_v35  ;;  %v552_v8 = vand.u32 2147483647, %v545_v35 }
 0x10a   : > { %946 = vlog2.f32 %v546_v47  ;;  %v641_v60 = vadd.f32 %v639_v41, %v630_v53  ;;  %v650_v61 = vrot.slane %v648_v58, 7  ;;  %v435_v39 = vstv %s848_s5 }
 0x10b   : > { %948 = vlog2.f32 %v386_v44  ;;  %v661_v62 = vrot.slane %v659_v59, 7  ;;  %v550_v7 = vadd.f32 1.0, %v549_v42  ;;  %vm1294_vm1 = vcmp.lt.f32.partialorder %v552_v8, 0.0004427343 }
 0x10c   : > { %950 = vlog2.f32 %v425_v51  ;;  %v652_v63 = vadd.f32 %v650_v61, %v641_v60  ;;  %v689_v58 = vstv %s852_s7 }
 0x10d   : > { %952 = vlog2.f32 %v542_v29  ;;  %v663_v1 = vmul.f32 %v661_v62, %v1220_v40  ;;  %v392_v40 = vand.u32 2147483647, %v1273_v28  ;;  %v551_v18 = vmul.f32 %v550_v7, %v545_v35 }
 0x10e   : > { %954 = vlog2.f32 %v382_v14  ;;  %v655_v52 = vadd.f32 %v654_v0, %v652_v63  ;;  %v556_v28 = vstv %s850_s6 }
 0x10f   : > { %956 = vlog2.f32 %v421_v21  ;;  %v665_v2 = vrot.slane %v663_v1, 1  ;;  %vm393_vm2 = vcmp.lt.f32.partialorder %v392_v40, 0.0004427343 }
 0x111   : > { %v667_v3 = vadd.f32 %v665_v2, %v655_v52 }
 0x113   : > { %v674_v6 = vmax.f32 %v667_v3, 1e-06 }
 0x115   : > { %v675_v9 = vmin.f32 %v674_v6, 0.999999 }
 0x117   : > { %v947_v38 = vpop.eup %946  ;;  %v678_v14 = vsub.f32 0.0, %v675_v9  ;;  %958 = vlog2.f32 %v675_v9 }
 0x118   : > { %v949_v46 = vpop.eup %948  ;;  %v548_v12 = vmul.f32 0.6931472, %v947_v38 }
 0x119   : > { %v951_v10 = vpop.eup %950  ;;  %v388_v16 = vmul.f32 0.6931472, %v949_v46  ;;  %v679_v21 = vadd.f32 1.0, %v678_v14  ;;  %v682_v44 = vmul.f32 -0.5, %v678_v14  ;;  %v685_v50 = vand.u32 2147483647, %v678_v14 }
 0x11a   : > { %v953_v15 = vpop.eup %952  ;;  %v427_v19 = vmul.f32 0.6931472, %v951_v10  ;;  %v554_v24 = vsel %vm1294_vm1, %v551_v18, %v548_v12 }
 0x11b   : > { %v955_v22 = vpop.eup %954  ;;  %v544_v27 = vmul.f32 0.6931472, %v953_v15  ;;  %960 = vlog2.f32 %v679_v21  ;;  %v394_v29 = vsel %vm393_vm2, %v391_v23, %v388_v16  ;;  %v683_v34 = vadd.f32 1.0, %v682_v44 }
 0x11c   : > { %v957_v25 = vpop.eup %956  ;;  %v384_v30 = vmul.f32 0.6931472, %v955_v22  ;;  %v433_v31 = vsel %vm432_vm3, %v430_v26, %v427_v19  ;;  %vm686_vm4 = vcmp.lt.f32.partialorder %v685_v50, 0.0004427343 }
 0x11d   : > { %v555_v32 = vsub.f32 %v544_v27, %v554_v24  ;;  %v423_v33 = vmul.f32 0.6931472, %v957_v25  ;;  %v684_v56 = vmul.f32 %v683_v34, %v678_v14 }
 0x11e   : > { %v395_v35 = vsub.f32 %v384_v30, %v394_v29 }
 0x11f   : > { %v434_v37 = vsub.f32 %v423_v33, %v433_v31  ;;  %v557_v43 = vmul.f32 %v556_v28, %v555_v32 }
 0x120   : > { %v397_v47 = vmul.f32 %v396_v36, %v395_v35 }
 0x121   : > { %v436_v48 = vmul.f32 %v435_v39, %v434_v37  ;;  %v830_v49 = vmul.f32 -1.442695, %v557_v43 }
 0x122   : > { %v826_v51 = vmul.f32 -1.442695, %v397_v47 }
 0x123   : > { %v828_v54 = vmul.f32 -1.442695, %v436_v48  ;;  %962 = vpow2.f32 %v830_v49 }
 0x124   : > { %v959_v45 = vpop.eup %958  ;;  %964 = vpow2.f32 %v826_v51 }
 0x125   : > { %v677_v57 = vmul.f32 0.6931472, %v959_v45  ;;  %966 = vpow2.f32 %v828_v54 }
 0x128   : > { %v961_v53 = vpop.eup %960 }
 0x129   : > { %v681_v55 = vmul.f32 0.6931472, %v961_v53 }
 0x12b   : > { %v687_v41 = vsel %vm686_vm4, %v684_v56, %v681_v55 }
 0x12c   : > { %v688_v59 = vsub.f32 %v677_v57, %v687_v41 }
 0x12e   : > { %v690_v60 = vmul.f32 %v689_v58, %v688_v59 }
 0x130   : > { %v832_v61 = vmul.f32 -1.442695, %v690_v60  ;;  %v963_v62 = vpop.eup %962 }
 0x131   : > { %v965_v63 = vpop.eup %964  ;;  %v561_v1 = vadd.f32 1.0, %v963_v62 }
 0x132   : > { %968 = vpow2.f32 %v832_v61  ;;  %v967_v0 = vpop.eup %966  ;;  %v401_v52 = vadd.f32 1.0, %v965_v63 }
 0x133   : > { %v440_v2 = vadd.f32 1.0, %v967_v0  ;;  %970 = vrcp.f32 %v561_v1 }
 0x134   : > { %972 = vrcp.f32 %v401_v52 }
 0x135   : > { %974 = vrcp.f32 %v440_v2 }
 0x13f   : > { %v969_v42 = vpop.eup %968 }
 0x140   : > { %v694_v3 = vadd.f32 1.0, %v969_v42  ;;  %v971_v4 = vpop.eup %970 }
 0x141   : > { %v973_v38 = vpop.eup %972  ;;  %v698_v6 = vrot.slane %v971_v4, 6 }
 0x142   : > { %976 = vrcp.f32 %v694_v3  ;;  %v975_v5 = vpop.eup %974 }
 0x143   : > { %v704_v8 = vsel %vm703_vm5, %v973_v38, %v975_v5 }
 0x144   : > { %v705_v9 = vsel %vm262_vm0, %v704_v8, %v698_v6 }
 0x14f   : > { %v977_v7 = vpop.eup %976 }
 0x150   : > { %v701_v46 = vrot.slane %v977_v7, 5 }
 0x152   : > { %v707_v10 = vsel %vm706_vm6, %v705_v9, %v701_v46 }
 0x153   : > { %708 = vst [vmem:[%s250_s10] sm:$0xf] %v707_v10 }
 0x154   : > { %1021 = shalt.err (!%p1018_p4)
}
 0x155   : > { %s1022_s30 = scalar_lea.hbm %s1309_s20, 64  ;;  %s1026_s0 = scalar_lea.hbm %s1349_s3, 128 }
 0x156   : > { %p1023_p5 = scmp.ne.s32.totalorder %s1309_s20, %s1022_s30  ;;  %p1027_p12 = scmp.lt.s32.totalorder %s1309_s20, %s1349_s3 }
 0x157   : > { %p1028_p0 = scmp.lt.s32.totalorder %s1026_s0, %s1022_s30 }
 0x158   : > { %p1024_p6 = pnand %p1023_p5, %p1372_p7 }
 0x159   : > { %p1029_p2 = por %p1028_p0, %p1027_p12 }
 0x15a   : > { %p1025_p11 = pneg %p1024_p6 }
 0x15c   : > { %p1030_p8 = pnand %p1029_p2, %p1025_p11 }
 0x15e   : > { %1033 = shalt.err (!%p1030_p8)
}
 0x15f   : > { %861 = dma.vmem_to_hbm [thread:$0]  (%p1372_p7), %s724_s11, 64, %s1309_s20, %s710_s26  }
 0x160 PF: > { %s735_s29 = sand.u32 1, %s1064_s12   ;;  %p1373_p9 = scmp.ne.s32.totalorder %s1358_s24, 0 }
 0x161   : > { %s736_s5 = scalar_lea.sflag [#allocation3], %s735_s29 }
 0x162   : > { %p871_p13 = pnand %p814_p10, %p1373_p9 }
 0x164   : > { %p872_p1 = pneg %p871_p13 }
 0x166   : > { %1059 = dma.done.wait (%p872_p1), %s736_s5, 64  }
 0x167   : > { %1061 = vsyncadd (%p872_p1), %s736_s5, 4294967232  ;;  %p15_p3 = scmp.ge.s32.totalorder %s1127_s18, 4   ;;  %s1374_s12 = smov %s1068_s13 }
 0x168   : > { %s1375_s13 = smov %s1072_s14  ;;  %s1376_s14 = smov %s1139_s21 }
 0x169   : > { %s1377_s15 = smov %s1127_s18  ;;  %17 = sbr.rel (!%p15_p3) target bundleno = 9 (0x9), region = 121 }
 0x16e   :  { %741 = vsyncpa [#allocation3], 1 }
 0x16f   :  { %743 = vsyncpa [#allocation3 + $0x1], 1 }
 0x170   :  { %744 = vsyncpa [#allocation4], 1 }
 0x171   :  { %746 = vsyncpa [#allocation4 + $0x1], 1 }
 0x172   :  { %747 = vsyncpa [#allocation6], 1 }

</bundles_post_ra>
